<compile_context>
chip_gen: v5e
topology: v5e:2x2
jax: 0.10.0
libtpu: 0.0.40
codegen_flags: <defaults>
</compile_context>

<pallas_src>
import jax
import jax.numpy as jnp
from jax.experimental import pallas as pl
from jax.experimental.pallas import tpu as pltpu


class Count:
    """Iterator that counts upward forever (mirror of the torch-side helper)."""

    def __init__(self, start=0):
        self.num = start

    def __iter__(self):
        return self

    def __next__(self):
        num = self.num
        self.num += 1
        return num


def p1oint_kernel(log_r2_ref, c_ref, o_ref):
    # log_r2_ref: SMEM (1,) f32 holding the precomputed scalar log(x^2 + y^2).
    # c_ref / o_ref: VMEM (block_r, L) f32 tiles.
    # One scalar-broadcast mul (VALU) + one exp (EUP) per element; memory-bound.
    o_ref[...] = jnp.exp(c_ref[...] * log_r2_ref[0])


def p1oint_batched(x, y, c):
    """Elementwise (x**2 + y**2) ** c over an arbitrary-shaped exponent array."""
    c = jnp.asarray(c, jnp.float32)
    orig_shape = c.shape
    if c.ndim == 0:
        c2 = c.reshape(1, 1)
    elif c.ndim == 1:
        c2 = c.reshape(1, -1)
    else:
        c2 = c.reshape(-1, c.shape[-1])
    r, l = c2.shape

    # Hoisted scalar math (once per call, not per element / per grid step).
    # (x^2 + y^2) ** c == exp(c * log(x^2 + y^2)); base > 0 for random-normal
    # parameters, so the reformulation is safe here.
    # TODO(synk): exp/log form is undefined for r2 == 0 with c == 0 (0^0); that
    # combination cannot occur with random-normal params and Count(start=2).
    xf = jnp.asarray(x, jnp.float32)
    yf = jnp.asarray(y, jnp.float32)
    log_r2 = jnp.log(xf * xf + yf * yf).reshape(1)

    # Row-tile size: ~2 MiB per f32 tile per array, multiple of 8 sublanes.
    target_bytes = 2 << 20
    tile_r = (target_bytes // (4 * l)) // 8 * 8
    tile_r = max(8, min(1024, int(tile_r)))

    if r <= tile_r:
        block_r = r                      # block == full dim: always legal
        grid = (1,)
    else:
        block_r = tile_r                 # multiple of 8; last dim == full dim
        grid = (pl.cdiv(r, tile_r),)     # ragged last tile handled by Pallas

    out = pl.pallas_call(
        p1oint_kernel,
        out_shape=jax.ShapeDtypeStruct((r, l), jnp.float32),
        grid=grid,
        in_specs=[
            pl.BlockSpec(memory_space=pltpu.MemorySpace.SMEM),   # log_r2 scalar
            pl.BlockSpec((block_r, l), lambda i: (i, 0)),        # exponents
        ],
        out_specs=pl.BlockSpec((block_r, l), lambda i: (i, 0)),
        compiler_params=pltpu.CompilerParams(
            dimension_semantics=("parallel",),   # v7x: shard rows over 2 TCs
            vmem_limit_bytes=32 << 20,           # explicit, fits v7x's 64 MiB
        ),
    )(log_r2, c2)
    return out.reshape(orig_shape)


def p1oint_forward(x, y, c):
    """Single-exponent forward matching P1oint(x, y).forward(c).

    Per perf review: a kernel launch (+DMAs, padded tile) for one scalar is
    pure fixed overhead, so the scalar path is plain JAX.
    """
    xf = jnp.asarray(x, jnp.float32)
    yf = jnp.asarray(y, jnp.float32)
    return (xf * xf + yf * yf) ** jnp.asarray(c, jnp.float32)


if __name__ == "__main__":
    # Deterministic "parameters" for the module (scalars x, y).
    key = jax.random.PRNGKey(0)
    params = jax.random.normal(key, (2,), dtype=jnp.float32)
    x_param = float(params[0])
    y_param = float(params[1])

    # A lane-dense batch of 8*128 successive Count exponents (2, 3, ..., 1025).
    counter = Count(start=2)
    c_batch = jnp.asarray(
        [next(counter) for _ in range(8 * 128)], dtype=jnp.float32
    ).reshape(8, 128)

    out = jax.block_until_ready(p1oint_batched(x_param, y_param, c_batch))

    # The module's original single-c forward (first Count value, c = 2) is just
    # the first element of the batched result -- no extra dispatch needed.
    val = float(out[0, 0])
    print("value is {:.5f}".format(val))

    # --- cross-checks against plain JAX ---
    r2 = x_param ** 2 + y_param ** 2

    # c = 2 (the module call) checked tightly.
    ref0 = r2 ** 2
    assert abs(val - ref0) <= 1e-4 * max(1.0, abs(ref0)), (val, ref0)

    # Scalar-path forward agrees too.
    val_scalar = float(jax.block_until_ready(p1oint_forward(x_param, y_param, 2.0)))
    assert abs(val_scalar - ref0) <= 1e-4 * max(1.0, abs(ref0)), (val_scalar, ref0)

    # Batched check: large integer exponents over/underflow in f32, so values
    # that are both "huge" (> 1e37, incl. +inf) count as matching.
    ref = jnp.power(jnp.float32(r2), c_batch)
    finite = jnp.isfinite(ref) & jnp.isfinite(out)
    close = jnp.abs(out - ref) <= 1e-3 * jnp.maximum(1.0, jnp.abs(ref))
    huge_ref = ref > 1e37
    huge_out = out > 1e37
    ok = jnp.where(finite, close, huge_ref & huge_out)
    assert bool(jnp.all(ok)), "batched mismatch vs JAX reference"

    # Non-aligned / ragged shape exercises the grid + edge-tile path (no pad).
    c_ragged = jnp.arange(2, 2 + 37, dtype=jnp.float32)  # 1-D, length 37
    out_r = jax.block_until_ready(p1oint_batched(x_param, y_param, c_ragged))
    ref_r = jnp.power(jnp.float32(r2), c_ragged)
    assert bool(
        jnp.all(jnp.abs(out_r - ref_r) <= 1e-3 * jnp.maximum(1.0, jnp.abs(ref_r)))
    ), "ragged-shape mismatch vs JAX reference"

    print("KERNEL_OK")
</pallas_src>

<mosaic_0001>
module attributes {stable_mosaic.version = 11 : i64} {
  func.func @p1oint_kernel(%arg0: i32, %arg1: memref<1xf32, #tpu.memory_space<smem>>, %arg2: memref<8x128xf32, #tpu.memory_space<vmem>>, %arg3: memref<8x128xf32, #tpu.memory_space<vmem>>) attributes {dimension_semantics = [#tpu.dimension_semantics<parallel>], iteration_bounds = array<i64: 1>, scalar_prefetch = 0 : i64, scratch_operands = 0 : i64, tpu.core_type = #tpu.core_type<tc>, window_params = [{transform_indices = @transform_0, window_bounds = array<i64: 1>}, {transform_indices = @transform_1, window_bounds = array<i64: 8, 128>}, {transform_indices = @transform_2, window_bounds = array<i64: 8, 128>}]} {
    %c0 = arith.constant 0 : index
    %c0_0 = arith.constant 0 : index
    %0 = vector.load %arg2[%c0, %c0_0] : memref<8x128xf32, #tpu.memory_space<vmem>>, vector<8x128xf32>
    %c0_1 = arith.constant 0 : index
    %1 = memref.load %arg1[%c0_1] : memref<1xf32, #tpu.memory_space<smem>>
    %2 = vector.broadcast %1 : f32 to vector<8x128xf32>
    %3 = arith.mulf %0, %2 : vector<8x128xf32>
    %4 = math.exp %3 : vector<8x128xf32>
    %c0_2 = arith.constant 0 : index
    %c0_3 = arith.constant 0 : index
    %5 = vector.load %arg3[%c0_2, %c0_3] : memref<8x128xf32, #tpu.memory_space<vmem>>, vector<8x128xf32>
    tpu.vector_store %arg3[%c0_2, %c0_3], %4 {strides = array<i32>} : memref<8x128xf32, #tpu.memory_space<vmem>>, vector<8x128xf32>,
    return
  }
  func.func @transform_0(%arg0: i32) -> i32 {
    %c0_i32 = arith.constant 0 : i32
    %c0_i32_0 = arith.constant 0 : i32
    return %c0_i32 : i32
  }
  func.func @transform_1(%arg0: i32) -> (i32, i32) {
    %c0_i32 = arith.constant 0 : i32
    %c0_i32_0 = arith.constant 0 : i32
    return %arg0, %c0_i32 : i32, i32
  }
  func.func @transform_2(%arg0: i32) -> (i32, i32) {
    %c0_i32 = arith.constant 0 : i32
    %c0_i32_0 = arith.constant 0 : i32
    return %arg0, %c0_i32 : i32, i32
  }
}

</mosaic_0001>

<bundles_post_ra>
// kernel: tpu_custom_call.1
= control target key start
LH: loop header
LB: loop body
LE: loop exit
PB: predicated region body
PF: predicated region fallthrough
CT: control target
= control target key end

     0   :  { %8 = vsyncpa [#allocation4], 0  ;;  %s133_s0 = inlined_call_operand.<no memory space> [shape: f32[1], index: 0, kind: input, shape index: {}]   ;;  %s134_s1 = inlined_call_operand.hbm [shape: f32[8,128], index: 1, kind: input, shape index: {}]   ;;  %s135_s2 = inlined_call_operand.hbm [shape: f32[8,128], index: 2, kind: output, shape index: {}]  }
   0x1   :  { %9 = vsyncpa [#allocation5], 0  ;;  %s17_s11 = sshll.u32 %s134_s1, 4  ;;  %s107_s12 = smov [#allocation3]   ;;  %s18_s11 = int_to_ptr.hbm [resolvable:$true] %s17_s11 }
   0x2   :  { %s19_s13 = sshll.u32 %s107_s12, 4  ;;  %s20_s13 = int_to_ptr.vmem [resolvable:$true] %s19_s13 }
   0x3   :  { %22 = dma.hbm_to_vmem [thread:$0]  %s18_s11, 128, %s20_s13, [#allocation4]  }
   0x4   :  { %103 = dma.done.wait [#allocation4], 128  }
   0x5   :  { %104 = vsyncadd [#allocation4], 4294967168  ;;  %v29_v0 = vstv %s133_s0  ;;  %v27_v1 = vld [vmem:[#allocation3] sm:$0xff]  ;;  %s108_s16 = smov [#allocation6]   ;;  %s41_s1 = sshll.u32 %s135_s2, 4  ;;  %s42_s1 = int_to_ptr.hbm [resolvable:$true] %s41_s1 }
   0x6   :  { %v30_v2 = vmul.f32 %v29_v0, %v27_v1  ;;  %s39_s17 = sshll.u32 %s108_s16, 4  ;;  %s40_s17 = int_to_ptr.vmem [resolvable:$true] %s39_s17 }
   0x8   :  { %v31_v3 = vmul.f32 1.442695, %v30_v2 }
   0xa   :  { %53 = vpow2.f32 %v31_v3 }
  0x10   :  { %v54_v4 = vpop.eup %53 }
  0x11   :  { %33 = vst [vmem:[#allocation6] sm:$0xff] %v54_v4 }
  0x12   :  { %44 = dma.vmem_to_hbm [thread:$0]  %s40_s17, 128, %s42_s1, [#allocation5]  }
  0x13   :  { %105 = dma.done.wait [#allocation5], 128  }
  0x14   :  { %106 = vsyncadd [#allocation5], 4294967168 }
  0x15   :  { %49 = vsyncpa [#allocation4], 1 }
  0x16   :  { %50 = vsyncpa [#allocation5], 1 }

</bundles_post_ra>
